<compile_context>
chip_gen: v7x
topology: tpu7x:2x2x1
jax: 0.10.0
libtpu: 0.0.40
codegen_flags: <defaults>
</compile_context>

<pallas_src>
import math

import jax
import jax.numpy as jnp
from jax import lax
from jax.experimental import pallas as pl
from jax.experimental.pallas import tpu as pltpu

_INV_SQRT2 = 1.0 / math.sqrt(2.0)
_LANE = 128
_MIB = 1024 * 1024


# --------------------------------------------------------------------------- #
# Hardware-aware budgets
# --------------------------------------------------------------------------- #
def _vmem_budgets():
    """Return (in-flight tile-bytes budget, scoped vmem_limit_bytes)."""
    vmem_cap = None
    try:
        info = pltpu.get_tpu_info()
        vmem_cap = getattr(info, "vmem_capacity_bytes", None)
    except Exception:
        vmem_cap = None
    if vmem_cap is None:
        return 16 * _MIB, 32 * _MIB          # unknown gen: conservative, safe everywhere
    if vmem_cap <= 96 * _MIB:                # v7x-class: 64 MiB per TensorCore
        return 12 * _MIB, 28 * _MIB
    return 24 * _MIB, 48 * _MIB              # v5e / v6e: 128 MiB physical VMEM


# --------------------------------------------------------------------------- #
# Kernels
# --------------------------------------------------------------------------- #
def _gelu_exact_f32(g32):
    # Exact erf GELU, matching F.gelu's default. Keep the f32 intermediate even
    # for low-precision inputs (PyTorch parity); do not switch to tanh.
    return 0.5 * g32 * (1.0 + lax.erf(g32 * _INV_SQRT2))


def _geglu_split_kernel(a_ref, g_ref, o_ref):
    # Halves arrive as separate lane-dense DMA tiles; exactly one f32 cast each.
    a = a_ref[...].astype(jnp.float32)
    g = g_ref[...].astype(jnp.float32)
    o_ref[...] = (a * _gelu_exact_f32(g)).astype(o_ref.dtype)


def _geglu_fused_kernel(x_ref, o_ref):
    # Fallback for small / lane-unaligned half-widths: whole-row block, split
    # in-kernel (block last dim == full array dim, so the (8,128) rule holds).
    blk = x_ref[...]
    h = blk.shape[-1] // 2
    a = blk[:, :h].astype(jnp.float32)
    g = blk[:, h:].astype(jnp.float32)
    o_ref[...] = (a * _gelu_exact_f32(g)).astype(o_ref.dtype)


# --------------------------------------------------------------------------- #
# Tiling
# --------------------------------------------------------------------------- #
def _sublane_quantum(dtype):
    itemsize = jnp.dtype(dtype).itemsize
    return max(8, 32 // itemsize)            # 8 for f32, 16 for bf16, 32 for int8/fp8


def _round_up(x, m):
    return ((x + m - 1) // m) * m


def _choose_tiles(rows, h, dtype, tile_budget):
    """Pick (tm, tn, split_halves) sized to the VMEM budget."""
    itemsize = jnp.dtype(dtype).itemsize
    quantum = _sublane_quantum(dtype)

    split_halves = (h % _LANE == 0)
    tn = h
    if split_halves:
        cap = min(h, 2048)
        tn = _LANE
        for cand in range(cap - cap % _LANE, _LANE - 1, -_LANE):
            if h % cand == 0:
                tn = cand
                break

    width = tn if split_halves else h
    # Per grid step (double buffered): a-block + g-block + out-block, each (tm, width).
    tm = tile_budget // (6 * max(width, 1) * itemsize)
    # Narrow column tile (divisor degeneracy / small H): allow much taller row
    # tiles so per-step bytes stay >= ~4 MiB against the fixed step overhead.
    tm_cap = 4096 if width <= 256 else 1024
    tm = max(quantum, min(tm_cap, (tm // quantum) * quantum))
    tm = min(tm, _round_up(rows, quantum))   # don't overshoot tiny inputs

    nj = (h // tn) if split_halves else 1
    # v7x has 2 TensorCores: a size-1 grid idles one of them. Split the rows.
    if pl.cdiv(rows, tm) * nj < 2 and rows > quantum:
        tm = max(quantum, _round_up(pl.cdiv(rows, 2), quantum))
    return tm, tn, split_halves


def _make_in_spec(shape, index_map, buffered=None):
    """BlockSpec, optionally with deeper pipelining; falls back if unsupported."""
    if buffered is not None:
        try:
            return pl.BlockSpec(shape, index_map, pipeline_mode=pl.Buffered(buffered))
        except (TypeError, AttributeError):
            pass
    return pl.BlockSpec(shape, index_map)


# --------------------------------------------------------------------------- #
# Driver
# --------------------------------------------------------------------------- #
def _geglu_2d(x2d, h):
    """x2d: (rows, 2h) -> (rows, h), split along the last axis."""
    rows, two_h = x2d.shape
    assert two_h == 2 * h
    tile_budget, vmem_limit = _vmem_budgets()
    tm, tn, split_halves = _choose_tiles(rows, h, x2d.dtype, tile_budget)
    itemsize = jnp.dtype(x2d.dtype).itemsize

    ni = pl.cdiv(rows, tm)   # ragged row grid: Pallas clips the last tile's DMAs

    if split_halves:
        nj = h // tn
        step_bytes = 3 * tm * tn * itemsize
        buffered = 3 if (step_bytes < 2 * _MIB and ni * nj >= 4) else None
        out2d = pl.pallas_call(
            _geglu_split_kernel,
            out_shape=jax.ShapeDtypeStruct((rows, h), x2d.dtype),
            grid_spec=pltpu.PrefetchScalarGridSpec(
                num_scalar_prefetch=0,
                grid=(ni, nj),
                in_specs=[
                    _make_in_spec((tm, tn), lambda i, j: (i, j), buffered),       # "x" half
                    _make_in_spec((tm, tn), lambda i, j: (i, j + nj), buffered),  # "gates" half
                ],
                out_specs=pl.BlockSpec((tm, tn), lambda i, j: (i, j)),
            ),
            compiler_params=pltpu.CompilerParams(
                dimension_semantics=("parallel", "parallel"),
                vmem_limit_bytes=vmem_limit,
            ),
        )(x2d, x2d)   # same buffer passed twice: read-only aliasing, no extra copy
    else:
        step_bytes = 3 * tm * h * itemsize
        buffered = 3 if (step_bytes < 2 * _MIB and ni >= 4) else None
        out2d = pl.pallas_call(
            _geglu_fused_kernel,
            out_shape=jax.ShapeDtypeStruct((rows, h), x2d.dtype),
            grid_spec=pltpu.PrefetchScalarGridSpec(
                num_scalar_prefetch=0,
                grid=(ni,),
                in_specs=[_make_in_spec((tm, two_h), lambda i: (i, 0), buffered)],
                out_specs=pl.BlockSpec((tm, h), lambda i: (i, 0)),
            ),
            compiler_params=pltpu.CompilerParams(
                dimension_semantics=("parallel",),
                vmem_limit_bytes=vmem_limit,
            ),
        )(x2d)
    return out2d


def geglu(x, dim=-1):
    """GEGLU along `dim` (matches GEGLU.forward with f=F.gelu, exact erf)."""
    ndim = x.ndim
    if dim < 0:
        dim += ndim
    shape = x.shape
    two_h = shape[dim]
    assert two_h % 2 == 0, "GEGLU requires an even split dimension"
    h = two_h // 2

    prefix = math.prod(shape[:dim])
    suffix = math.prod(shape[dim + 1:])
    # chunk(2, dim) == splitting the flattened (dim x trailing) columns at
    # h*suffix, so every split dim reduces to a last-axis split via a free
    # reshape (no moveaxis / HBM transpose round trip around the kernel).
    x2d = x.reshape(max(prefix, 1), two_h * suffix)
    out2d = _geglu_2d(x2d, h * suffix)
    return out2d.reshape(shape[:dim] + (h,) + shape[dim + 1:])


def geglu_ref(x, dim=-1):
    a, g = jnp.split(x, 2, axis=dim)
    return a * jax.nn.gelu(g, approximate=False)


# --------------------------------------------------------------------------- #
# Demo / self-test
# --------------------------------------------------------------------------- #
if __name__ == "__main__":
    key = jax.random.PRNGKey(0)

    # Small module-scale shape (H < 128 -> fused fallback path).
    B, S, H = 2, 8, 32
    x_small = jax.random.normal(key, (B, S, 2 * H), dtype=jnp.float32)
    out_small = jax.block_until_ready(geglu(x_small))
    ref_small = geglu_ref(x_small)
    assert out_small.shape == (B, S, H)
    assert jnp.allclose(out_small, ref_small, atol=1e-5, rtol=1e-5), "small-shape mismatch"

    # Lane-aligned half-width with a ragged row count: exercises the DMA-level
    # split fast path plus the cdiv-clipped last row tile (no pad / no slice).
    B2, S2, H2 = 3, 20, 256
    x_big = jax.random.normal(jax.random.PRNGKey(1), (B2, S2, 2 * H2), dtype=jnp.float32)
    out_big = jax.block_until_ready(geglu(x_big))
    ref_big = geglu_ref(x_big)
    assert out_big.shape == (B2, S2, H2)
    assert jnp.allclose(out_big, ref_big, atol=1e-5, rtol=1e-5), "aligned-shape mismatch"

    # Non-last split dim: handled by a free reshape (no transposes); the
    # flattened half-width (16*64 = 1024) is lane-aligned -> split path.
    x_mid = jax.random.normal(jax.random.PRNGKey(2), (8, 32, 64), dtype=jnp.float32)
    out_mid = jax.block_until_ready(geglu(x_mid, dim=1))
    ref_mid = geglu_ref(x_mid, dim=1)
    assert out_mid.shape == (8, 16, 64)
    assert jnp.allclose(out_mid, ref_mid, atol=1e-5, rtol=1e-5), "dim=1 mismatch"

    print("KERNEL_OK")
</pallas_src>

<mosaic_0001>
module attributes {stable_mosaic.version = 11 : i64} {
  func.func @_geglu_fused_kernel(%arg0: i32, %arg1: memref<8x64xf32, #tpu.memory_space<vmem>>, %arg2: memref<8x32xf32, #tpu.memory_space<vmem>>) attributes {dimension_semantics = [#tpu.dimension_semantics<parallel>], iteration_bounds = array<i64: 2>, scalar_prefetch = 0 : i64, scratch_operands = 0 : i64, tpu.core_type = #tpu.core_type<tc>, window_params = [{transform_indices = @transform_0, window_bounds = array<i64: 8, 64>}, {transform_indices = @transform_1, window_bounds = array<i64: 8, 32>}]} {
    %c0 = arith.constant 0 : index
    %c0_0 = arith.constant 0 : index
    %0 = vector.load %arg1[%c0, %c0_0] : memref<8x64xf32, #tpu.memory_space<vmem>>, vector<8x64xf32>
    %1 = vector.extract_strided_slice %0 {offsets = [0, 0], sizes = [8, 32], strides = [1, 1]} : vector<8x64xf32> to vector<8x32xf32>
    %2 = vector.extract_strided_slice %0 {offsets = [0, 32], sizes = [8, 32], strides = [1, 1]} : vector<8x64xf32> to vector<8x32xf32>
    %cst = arith.constant 5.000000e-01 : f32
    %3 = vector.broadcast %cst : f32 to vector<8x32xf32>
    %4 = arith.mulf %3, %2 : vector<8x32xf32>
    %cst_1 = arith.constant 0.707106769 : f32
    %5 = vector.broadcast %cst_1 : f32 to vector<8x32xf32>
    %6 = arith.mulf %2, %5 : vector<8x32xf32>
    %7 = math.erf %6 : vector<8x32xf32>
    %cst_2 = arith.constant 1.000000e+00 : f32
    %8 = vector.broadcast %cst_2 : f32 to vector<8x32xf32>
    %9 = arith.addf %8, %7 : vector<8x32xf32>
    %10 = arith.mulf %4, %9 : vector<8x32xf32>
    %11 = arith.mulf %1, %10 : vector<8x32xf32>
    %c0_3 = arith.constant 0 : index
    %c0_4 = arith.constant 0 : index
    %12 = vector.load %arg2[%c0_3, %c0_4] : memref<8x32xf32, #tpu.memory_space<vmem>>, vector<8x32xf32>
    tpu.vector_store %arg2[%c0_3, %c0_4], %11 {strides = array<i32>} : memref<8x32xf32, #tpu.memory_space<vmem>>, vector<8x32xf32>,
    return
  }
  func.func @transform_0(%arg0: i32) -> (i32, i32) {
    %c0_i32 = arith.constant 0 : i32
    %c0_i32_0 = arith.constant 0 : i32
    return %arg0, %c0_i32 : i32, i32
  }
  func.func @transform_1(%arg0: i32) -> (i32, i32) {
    %c0_i32 = arith.constant 0 : i32
    %c0_i32_0 = arith.constant 0 : i32
    return %arg0, %c0_i32 : i32, i32
  }
}

</mosaic_0001>

<bundles_post_ra>
// kernel: tpu_custom_call.1
= control target key start
LH: loop header
LB: loop body
LE: loop exit
PB: predicated region body
PF: predicated region fallthrough
CT: control target
= control target key end

     0   :  { %6 = vsyncpa [#allocation3], 0  ;;  %s562_s0 = inlined_call_operand.hbm [shape: f32[16,64], index: 0, kind: input, shape index: {}]   ;;  %s563_s1 = inlined_call_operand.hbm [shape: f32[16,32], index: 1, kind: output, shape index: {}]  }
   0x1   :  { %8 = vsyncpa [#allocation3 + $0x1], 0 }
   0x2   :  { %9 = vsyncpa [#allocation4], 0 }
   0x3   :  { %11 = vsyncpa [#allocation4 + $0x1], 0  ;;  %s401_s6 = smov 0   ;;  %s403_s7 = smov 0  }
   0x4   :  { %s405_s8 = smov 0   ;;  %s407_s9 = smov 0  }
   0x5 LB: > { %s422_s10 = sadd.s32 4294967295, %s386_s9   ;;  %s229_s11 = sadd.s32 4294967294, %s386_s9   ;;  %s386_s9 = sphi %s407_s9, %s578_s9   ;;  %s382_s8 = sphi %s405_s8, %s577_s8   ;;  %s378_s7 = sphi %s403_s7, %s576_s7   ;;  %s374_s6 = sphi %s401_s6, %s575_s6  }
   0x6   : > { %s426_s12 = sadd.s32 1, %s386_s9   ;;  %s24_s13 = sadd.s32 1, %s382_s8 }
   0x7   : > { %s21_s14 = ssub.s32 %s386_s9, %s426_s12  ;;  %p31_p0 = scmp.ne.s32.totalorder %s382_s8, %s378_s7 }
   0x8   : > { %p22_p1 = scmp.eq.s32.totalorder %s21_s14, 0  ;;  %p32_p2 = scmp.eq.s32.totalorder %s386_s9, 0 }
   0x9   : > { %p37_p3 = scmp.ne.s32.totalorder %s378_s7, %s374_s6  ;;  %p38_p4 = scmp.eq.s32.totalorder %s422_s10, 0 }
   0xa   : > { %s438_s15 = scalar_select %p22_p1, %s382_s8, %s24_s13  }
   0xb   : > { %p440_p5 = por %p32_p2, %p31_p0  ;;  %p444_p6 = por %p38_p4, %p37_p3 }
   0xc   : > { %p61_p7 = scmp.eq.s32.totalorder %s422_s10, 1  ;;  %p67_p8 = scmp.eq.s32.totalorder %s229_s11, 1 }
   0xd   : > { %p253_p10 = scmp.lt.s32.totalorder %s386_s9, 2  ;;  %s87_s20 = sand.u32 1, %s382_s8  }
   0xe   : > { %p451_p11 = por %p61_p7, %p31_p0  ;;  %p455_p12 = por %p67_p8, %p37_p3 }
   0xf   : > { %s233_s21 = sshll.u32 %s386_s9, 7  ;;  %s232_s22 = sshll.u32 %s87_s20, 3 }
  0x10   : > { %s567_s18 = scalar_select %p451_p11, 1, 0 }
  0x11   : > { %s568_s19 = scalar_select %p455_p12, 1, 0 }
  0x12   : > { %s464_s25 = scalar_lea.hbm %s562_s0, %s233_s21  ;;  %s91_s26 = scalar_lea.vmem [#allocation2], %s232_s22 }
  0x13   : > { %s98_s27 = sshll.u32 %s91_s26, 4  ;;  %p468_p13 = pnand %p253_p10, %p440_p5  ;;  %s472_s27 = int_to_ptr.vmem [resolvable:$true] %s98_s27 }
  0x14   : > { %s88_s29 = scalar_lea.sflag [#allocation3], %s87_s20  ;;  %s290_s30 = scalar_lea.hbm %s464_s25, 128 }
  0x15   : > { %p291_p2 = scmp.ne.s32.totalorder %s464_s25, %s290_s30  ;;  %p292_p3 = pneg %p468_p13 }
  0x16   : > { %s295_s4 = scalar_lea.hbm %s562_s0, 256  ;;  %p296_p5 = scmp.lt.u32.totalorder %s464_s25, %s562_s0 }
  0x17   : > { %p293_p4 = pnand %p292_p3, %p291_p2  ;;  %p297_p8 = scmp.lt.u32.totalorder %s295_s4, %s290_s30 }
  0x18   : > { %p299_p9 = scmp.lt.u32.totalorder %s290_s30, %s464_s25 }
  0x19   : > { %p294_p7 = pneg %p293_p4  ;;  %p298_p10 = por %p297_p8, %p296_p5 }
  0x1b   : > { %p300_p0 = por %p299_p9, %p298_p10 }
  0x1d   : > { %p301_p1 = pnand %p300_p0, %p294_p7 }
  0x1f   : > { %304 = shalt.err (!%p301_p1)
}
  0x20   : > { %s305_s13 = scalar_lea.vmem %s472_s27, 128  ;;  %s388_s14 = smov [#allocation2]  }
  0x21   : > { %p306_p2 = scmp.ne.s32.totalorder %s472_s27, %s305_s13  ;;  %s310_s16 = sshll.u32 %s388_s14, 4  ;;  %s311_s16 = int_to_ptr.vmem [resolvable:$false] %s310_s16 }
  0x22   : > { %s312_s20 = scalar_lea.vmem %s311_s16, 256  ;;  %p313_p11 = scmp.lt.s32.totalorder %s472_s27, %s311_s16 }
  0x23   : > { %p308_p4 = pnand %p306_p2, %p292_p3  ;;  %p314_p5 = scmp.lt.s32.totalorder %s312_s20, %s305_s13 }
  0x25   : > { %p309_p12 = pneg %p308_p4  ;;  %p315_p8 = por %p314_p5, %p313_p11 }
  0x27   : > { %p316_p9 = pnand %p315_p8, %p309_p12 }
  0x29   : > { %319 = shalt.err (!%p316_p9)
}
  0x2a   : > { %248 = dma.hbm_to_vmem [thread:$0]  (!%p468_p13), %s464_s25, 128, %s472_s27, %s88_s29  }
  0x2b   : > { %p570_p0 = scmp.lt.s32.totalorder %s386_s9, 3  ;;  %p571_p1 = scmp.ge.s32.totalorder %s386_s9, 1 }
  0x2d   : > { %p104_p3 = pnand %p571_p1, %p570_p0 }
  0x2e   : > { %s506_s21 = sand.u32 (!%p104_p3), 1, %s378_s7  }
  0x2f   : > { %107 = sbr.rel (%p104_p3) target bundleno = 204 (0xcc), region = 24  ;;  %s235_s22 = sshll.u32 (!%p104_p3), %s506_s21, 3 }
  0x30   : > { %s110_s23 = scalar_lea.sflag (!%p104_p3), [#allocation3], %s506_s21  ;;  %s113_s24 = scalar_lea.vmem (!%p104_p3), [#allocation2], %s235_s22 }
  0x36   : > { %365 = dma.done.wait (%p444_p6), %s110_s23, 128  }
  0x37   : > { %367 = vsyncadd (%p444_p6), %s110_s23, 4294967168  ;;  %v132_v0 = vld [vmem:[%s113_s24] sm:$0xff]  ;;  %s389_s25 = smov 96   ;;  %s238_s26 = sshll.u32 %s422_s10, 7  ;;  %vm143_vm0 = vcmask 261120  }
  0x38   : > { %v134_v1 = vmul.f32 0.70710677, %v132_v0  ;;  %v133_v2 = vmul.f32 0.5, %v132_v0  ;;  %s131_s27 = scalar_lea.vmem [#allocation5], %s235_s22  ;;  %s518_s30 = scalar_lea.hbm %s563_s1, %s238_s26 }
  0x39   : > { %s159_s28 = sshll.u32 %s131_s27, 4  ;;  %s146_s2 = scalar_lea.sflag [#allocation4], %s506_s21  ;;  %s520_s28 = int_to_ptr.vmem [resolvable:$true] %s159_s28 }
  0x3a   : > { %288 = verf.f32 %v134_v1  ;;  %s320_s3 = scalar_lea.vmem %s520_s28, 128  ;;  %p572_p11 = scmp.ne.s32.totalorder %s567_s18, 0 }
  0x3b   : > { %p321_p6 = scmp.ne.s32.totalorder %s520_s28, %s320_s3  ;;  %s390_s10 = smov [#allocation5]  }
  0x3c   : > { %s324_s4 = sshll.u32 %s390_s10, 4  ;;  %s325_s4 = int_to_ptr.vmem [resolvable:$false] %s324_s4 }
  0x3d   : > { %p322_p12 = pnand %p321_p6, %p572_p11  ;;  %s326_s5 = scalar_lea.vmem %s325_s4, 256 }
  0x3e   : > { %p327_p7 = scmp.lt.s32.totalorder %s520_s28, %s325_s4  ;;  %p328_p10 = scmp.lt.s32.totalorder %s326_s5, %s320_s3 }
  0x3f   : > { %p323_p13 = pneg %p322_p12 }
  0x40   : > { %p329_p2 = por %p328_p10, %p327_p7 }
  0x42   : > { %p330_p4 = pnand %p329_p2, %p323_p13 }
  0x44   : > { %v289_v3 = vpop.eup %288 }
  0x45   : > { %v136_v4 = vadd.f32 1.0, %v289_v3 }
  0x47   : > { %v137_v5 = vmul.f32 %v136_v4, %v133_v2 }
  0x49   : > { %139 = vrot.lane.b32.xlu0 %v137_v5, %s389_s25 }
  0xbb   : > { %v140_v6 = vpop.permute.xlu0 %139 }
  0xbc   : > { %v142_v7 = vmul.f32 %v140_v6, %v132_v0 }
  0xbe   : > { %144 = vst.msk [vmem:[%s131_s27] sm:$0xff] %vm143_vm0, %v142_v7 }
  0xbf   : > { %333 = shalt.err (!%p330_p4)
}
  0xc0   : > { %s334_s11 = scalar_lea.hbm %s518_s30, 128  ;;  %s338_s16 = scalar_lea.hbm %s563_s1, 256 }
  0xc1   : > { %p335_p5 = scmp.ne.s32.totalorder %s518_s30, %s334_s11  ;;  %p339_p0 = scmp.lt.u32.totalorder %s518_s30, %s563_s1 }
  0xc2   : > { %p340_p1 = scmp.lt.u32.totalorder %s338_s16, %s334_s11  ;;  %p342_p6 = scmp.lt.u32.totalorder %s334_s11, %s518_s30 }
  0xc3   : > { %p336_p8 = pnand %p335_p5, %p572_p11 }
  0xc4   : > { %p341_p3 = por %p340_p1, %p339_p0 }
  0xc5   : > { %p337_p9 = pneg %p336_p8 }
  0xc6   : > { %p343_p12 = por %p342_p6, %p341_p3 }
  0xc8   : > { %p344_p13 = pnand %p343_p12, %p337_p9 }
  0xca   : > { %347 = shalt.err (!%p344_p13)
}
  0xcb   : > { %243 = dma.vmem_to_hbm [thread:$0]  (%p572_p11), %s520_s28, 128, %s518_s30, %s146_s2  }
  0xcc PF: > { %s171_s22 = sand.u32 1, %s374_s6   ;;  %p573_p7 = scmp.ne.s32.totalorder %s568_s19, 0 }
  0xcd   : > { %p574_p10 = scmp.ge.s32.totalorder %s386_s9, 2  ;;  %s172_s23 = scalar_lea.sflag [#allocation4], %s171_s22 }
  0xcf   : > { %p250_p2 = pnand %p574_p10, %p573_p7 }
  0xd1   : > { %369 = dma.done.wait (!%p250_p2), %s172_s23, 128  }
  0xd2   : > { %371 = vsyncadd (!%p250_p2), %s172_s23, 4294967168  ;;  %p14_p4 = scmp.ge.s32.totalorder %s426_s12, 4   ;;  %s575_s6 = smov %s378_s7 }
  0xd3   : > { %s576_s7 = smov %s382_s8  ;;  %s577_s8 = smov %s438_s15 }
  0xd4   : > { %s578_s9 = smov %s426_s12  ;;  %16 = sbr.rel (!%p14_p4) target bundleno = 5 (0x5), region = 69 }
  0xdb   :  { %177 = vsyncpa [#allocation3], 1 }
  0xdc   :  { %179 = vsyncpa [#allocation3 + $0x1], 1 }
  0xdd   :  { %180 = vsyncpa [#allocation4], 1 }
  0xde   :  { %182 = vsyncpa [#allocation4 + $0x1], 1 }

</bundles_post_ra>
